<compile_context>
chip_gen: v6e
topology: v6e:2x2x1
jax: 0.10.0
libtpu: 0.0.40
codegen_flags: <defaults>
</compile_context>

<pallas_src>
import functools

import jax
import jax.numpy as jnp
from jax.experimental import pallas as pl
from jax.experimental.pallas import tpu as pltpu


def _layernorm(v, g, b, eps=1e-5):
    """Single-pass LayerNorm in f32 (mean + mean-of-squares -> one reduction pass each)."""
    mu = jnp.mean(v, axis=-1, keepdims=True)
    msq = jnp.mean(v * v, axis=-1, keepdims=True)
    var = jnp.maximum(msq - mu * mu, 0.0)
    return (v - mu) * jax.lax.rsqrt(var + eps) * g + b


def block_kernel(x_ref,
                 ln1g_ref, ln1b_ref,
                 wqkv_ref, wprojh_ref, bproj_ref,
                 ln2g_ref, ln2b_ref,
                 wfc1_ref, bfc1_ref, wfc2_ref, bfc2_ref,
                 o_ref,
                 *, num_heads, head_dim, compute_dtype):
    x = x_ref[0].astype(jnp.float32)                     # (N, C)
    N, C = x.shape
    H, hd = num_heads, head_dim
    cdt = compute_dtype
    scale = head_dim ** (-0.5)

    # ---- Attention branch ---------------------------------------------------
    h1 = _layernorm(x, ln1g_ref[...], ln1b_ref[...])
    # One full-width QKV matmul (MXU-friendly), f32 accumulation.
    qkv = jnp.dot(h1.astype(cdt), wqkv_ref[...],
                  preferred_element_type=jnp.float32)    # (N, 3C)

    # Head split: static lane slices stacked onto a new leading (batch) axis.
    # All head compute below is batched over that axis — no per-head matmuls.
    q = jnp.stack([qkv[:, h * hd:(h + 1) * hd] for h in range(H)], axis=0)            # (H,N,hd)
    k = jnp.stack([qkv[:, C + h * hd:C + (h + 1) * hd] for h in range(H)], axis=0)    # (H,N,hd)
    v = jnp.stack([qkv[:, 2 * C + h * hd:2 * C + (h + 1) * hd] for h in range(H)], axis=0)
    q = q * scale                                        # fold scale into q (smaller tensor)

    # Scores: batched "NT" matmul — no explicit k transpose materialized.
    s = jnp.einsum('hnd,hmd->hnm', q.astype(cdt), k.astype(cdt),
                   preferred_element_type=jnp.float32)   # (H, N, N)
    s = s - jnp.max(s, axis=-1, keepdims=True)
    p = jnp.exp(s)
    p = p * pl.reciprocal(jnp.sum(p, axis=-1, keepdims=True), approx=True)

    # Context: batched matmul over heads.
    ctx = jnp.einsum('hnm,hmd->hnd', p.astype(cdt), v.astype(cdt),
                     preferred_element_type=jnp.float32)  # (H, N, hd)

    # Output projection: a single batched einsum against the per-head slabs of
    # Wproj (read once), then a cheap sum over the head axis. Mathematically
    # identical to concat(heads) @ Wproj.
    proj = jnp.einsum('hnd,hdc->hnc', ctx.astype(cdt), wprojh_ref[...],
                      preferred_element_type=jnp.float32)  # (H, N, C)
    attn_out = jnp.sum(proj, axis=0) + bproj_ref[...]
    x1 = x + attn_out                                      # residual 1

    # ---- MLP branch ----------------------------------------------------------
    h2 = _layernorm(x1, ln2g_ref[...], ln2b_ref[...])
    m = jnp.dot(h2.astype(cdt), wfc1_ref[...],
                preferred_element_type=jnp.float32) + bfc1_ref[...]
    # Exact (erf-based) GELU in f32, matching torch.nn.GELU default.
    m = 0.5 * m * (1.0 + jax.lax.erf(m * (2.0 ** -0.5)))
    m = jnp.dot(m.astype(cdt), wfc2_ref[...],
                preferred_element_type=jnp.float32) + bfc2_ref[...]

    o_ref[0] = (x1 + m).astype(o_ref.dtype)                # residual 2


def block_forward(x, params, *, num_heads, compute_dtype=None):
    """Run the fused Block kernel. compute_dtype=jnp.bfloat16 casts all matmul
    weights/activation inputs to bf16 (f32 accumulation); default keeps x.dtype."""
    B, N, C = x.shape
    head_dim = C // num_heads
    hidden = params["wfc1_t"].shape[1]
    cdt = jnp.dtype(compute_dtype) if compute_dtype is not None else jnp.dtype(x.dtype)

    # Pre-arrange the (C, C) projection weight as per-head slabs (H, hd, C) in
    # the wrapper (plain XLA reshape, outside the kernel).
    wproj_heads = params["wproj_t"].reshape(num_heads, head_dim, C)

    weights = [
        params["ln1g"].astype(jnp.float32),
        params["ln1b"].astype(jnp.float32),
        params["wqkv_t"].astype(cdt),
        wproj_heads.astype(cdt),
        params["bproj"].astype(jnp.float32),
        params["ln2g"].astype(jnp.float32),
        params["ln2b"].astype(jnp.float32),
        params["wfc1_t"].astype(cdt),
        params["bfc1"].astype(jnp.float32),
        params["wfc2_t"].astype(cdt),
        params["bfc2"].astype(jnp.float32),
    ]

    in_specs = [pl.BlockSpec((1, N, C), lambda b: (b, 0, 0))]
    for w in weights:
        in_specs.append(
            pl.BlockSpec(w.shape, functools.partial(lambda b, nd: (0,) * nd, nd=w.ndim)))

    # Explicit VMEM budget: weights (double-buffered by the pipeliner) + I/O
    # blocks + f32 intermediates, with headroom; capped well under v7x's 64 MiB.
    weight_bytes = sum(int(w.size) * w.dtype.itemsize for w in weights)
    io_bytes = 4 * N * C * x.dtype.itemsize
    act_bytes = 4 * (N * (12 * C + 3 * hidden) + 3 * num_heads * N * N)
    vmem_limit = int(min(max(2 * weight_bytes + io_bytes + act_bytes + (4 << 20),
                             32 << 20), 56 << 20))

    flops = int(B * (6 * N * C * C + 4 * N * N * C + 4 * N * C * hidden))
    transcendentals = int(B * (num_heads * N * N + N * hidden + 3 * N))
    bytes_accessed = int(2 * B * N * C * x.dtype.itemsize + weight_bytes)

    kernel = functools.partial(block_kernel, num_heads=num_heads,
                               head_dim=head_dim, compute_dtype=cdt)

    return pl.pallas_call(
        kernel,
        out_shape=jax.ShapeDtypeStruct((B, N, C), x.dtype),
        grid_spec=pltpu.PrefetchScalarGridSpec(
            num_scalar_prefetch=0,
            grid=(B,),                      # batch axis is the parallel (megacore) axis
            in_specs=in_specs,
            out_specs=pl.BlockSpec((1, N, C), lambda b: (b, 0, 0)),
        ),
        compiler_params=pltpu.CompilerParams(
            dimension_semantics=("parallel",),
            vmem_limit_bytes=vmem_limit,
        ),
        cost_estimate=pl.CostEstimate(
            flops=flops,
            transcendentals=transcendentals,
            bytes_accessed=bytes_accessed,
        ),
    )(x, *weights)


def ref_block(x, p, *, num_heads):
    """Pure-JAX reference mirroring the PyTorch Block exactly."""
    B, N, C = x.shape
    hd = C // num_heads

    def ln(v, g, b):
        mu = v.mean(-1, keepdims=True)
        var = ((v - mu) ** 2).mean(-1, keepdims=True)
        return (v - mu) / jnp.sqrt(var + 1e-5) * g + b

    h1 = ln(x, p["ln1g"], p["ln1b"])
    qkv = h1 @ p["wqkv_t"]
    qkv = qkv.reshape(B, N, 3, num_heads, hd).transpose(2, 0, 3, 1, 4)
    q, k, v = qkv[0], qkv[1], qkv[2]
    attn = jnp.einsum("bhnd,bhmd->bhnm", q, k) * (hd ** -0.5)
    attn = jax.nn.softmax(attn, axis=-1)
    out = jnp.einsum("bhnm,bhmd->bhnd", attn, v).transpose(0, 2, 1, 3).reshape(B, N, C)
    out = out @ p["wproj_t"] + p["bproj"]
    x1 = x + out

    h2 = ln(x1, p["ln2g"], p["ln2b"])
    m = h2 @ p["wfc1_t"] + p["bfc1"]
    m = jax.nn.gelu(m, approximate=False)
    m = m @ p["wfc2_t"] + p["bfc2"]
    return x1 + m


def make_params(key, dim, num_heads, mlp_ratio=4.0):
    hidden = int(dim * mlp_ratio)
    ks = jax.random.split(key, 6)
    s = 0.05
    return {
        # LayerNorm params kept as (1, C) so they sit in VMEM with a lane axis.
        "ln1g": jnp.ones((1, dim), jnp.float32),
        "ln1b": jnp.zeros((1, dim), jnp.float32),
        "ln2g": jnp.ones((1, dim), jnp.float32),
        "ln2b": jnp.zeros((1, dim), jnp.float32),
        # Linear weights pre-transposed to (in, out). qkv_bias=False in the module.
        "wqkv_t": s * jax.random.normal(ks[0], (dim, 3 * dim), jnp.float32),
        "wproj_t": s * jax.random.normal(ks[1], (dim, dim), jnp.float32),
        "bproj": s * jax.random.normal(ks[2], (1, dim), jnp.float32),
        "wfc1_t": s * jax.random.normal(ks[3], (dim, hidden), jnp.float32),
        "bfc1": s * jax.random.normal(ks[4], (1, hidden), jnp.float32),
        "wfc2_t": s * jax.random.normal(ks[5], (hidden, dim), jnp.float32),
        "bfc2": jnp.zeros((1, dim), jnp.float32),
    }


if __name__ == "__main__":
    B, N, C = 2, 8, 32
    num_heads = 4

    key = jax.random.PRNGKey(0)
    kx, kp = jax.random.split(key)
    x = jax.random.normal(kx, (B, N, C), jnp.float32)
    params = make_params(kp, C, num_heads)

    ref = ref_block(x, params, num_heads=num_heads)

    # f32 compute path (default): tight check against the pure-JAX reference.
    out = jax.block_until_ready(block_forward(x, params, num_heads=num_heads))
    assert out.shape == (B, N, C)
    err = float(jnp.max(jnp.abs(out - ref)))
    assert err < 2e-3, err

    # bf16 compute path (MXU-native on v6e/v7x): loose check, f32 accumulation.
    out_bf16 = jax.block_until_ready(
        block_forward(x, params, num_heads=num_heads, compute_dtype=jnp.bfloat16))
    err_bf16 = float(jnp.max(jnp.abs(out_bf16 - ref)))
    assert err_bf16 < 0.1, err_bf16

    print("KERNEL_OK")
</pallas_src>

<mosaic_0001>
module attributes {stable_mosaic.version = 11 : i64} {
  func.func @block_kernel(%arg0: i32, %arg1: memref<1x8x32xf32, #tpu.memory_space<vmem>>, %arg2: memref<1x32xf32, #tpu.memory_space<vmem>>, %arg3: memref<1x32xf32, #tpu.memory_space<vmem>>, %arg4: memref<32x96xf32, #tpu.memory_space<vmem>>, %arg5: memref<4x8x32xf32, #tpu.memory_space<vmem>>, %arg6: memref<1x32xf32, #tpu.memory_space<vmem>>, %arg7: memref<1x32xf32, #tpu.memory_space<vmem>>, %arg8: memref<1x32xf32, #tpu.memory_space<vmem>>, %arg9: memref<32x128xf32, #tpu.memory_space<vmem>>, %arg10: memref<1x128xf32, #tpu.memory_space<vmem>>, %arg11: memref<128x32xf32, #tpu.memory_space<vmem>>, %arg12: memref<1x32xf32, #tpu.memory_space<vmem>>, %arg13: memref<1x8x32xf32, #tpu.memory_space<vmem>>) attributes {dimension_semantics = [#tpu.dimension_semantics<parallel>], iteration_bounds = array<i64: 2>, scalar_prefetch = 0 : i64, scratch_operands = 0 : i64, tpu.core_type = #tpu.core_type<tc>, window_params = [{transform_indices = @transform_0, window_bounds = array<i64: 1, 8, 32>}, {pipeline_mode = #tpu.pipeline_mode<synchronous>, transform_indices = @transform_1, window_bounds = array<i64: 1, 32>}, {pipeline_mode = #tpu.pipeline_mode<synchronous>, transform_indices = @transform_2, window_bounds = array<i64: 1, 32>}, {pipeline_mode = #tpu.pipeline_mode<synchronous>, transform_indices = @transform_3, window_bounds = array<i64: 32, 96>}, {pipeline_mode = #tpu.pipeline_mode<synchronous>, transform_indices = @transform_4, window_bounds = array<i64: 4, 8, 32>}, {pipeline_mode = #tpu.pipeline_mode<synchronous>, transform_indices = @transform_5, window_bounds = array<i64: 1, 32>}, {pipeline_mode = #tpu.pipeline_mode<synchronous>, transform_indices = @transform_6, window_bounds = array<i64: 1, 32>}, {pipeline_mode = #tpu.pipeline_mode<synchronous>, transform_indices = @transform_7, window_bounds = array<i64: 1, 32>}, {pipeline_mode = #tpu.pipeline_mode<synchronous>, transform_indices = @transform_8, window_bounds = array<i64: 32, 128>}, {pipeline_mode = #tpu.pipeline_mode<synchronous>, transform_indices = @transform_9, window_bounds = array<i64: 1, 128>}, {pipeline_mode = #tpu.pipeline_mode<synchronous>, transform_indices = @transform_10, window_bounds = array<i64: 128, 32>}, {pipeline_mode = #tpu.pipeline_mode<synchronous>, transform_indices = @transform_11, window_bounds = array<i64: 1, 32>}, {transform_indices = @transform_12, window_bounds = array<i64: 1, 8, 32>}]} {
    %c0 = arith.constant 0 : index
    %c0_0 = arith.constant 0 : index
    %c0_1 = arith.constant 0 : index
    %0 = vector.load %arg1[%c0, %c0_0, %c0_1] : memref<1x8x32xf32, #tpu.memory_space<vmem>>, vector<1x8x32xf32>
    %1 = vector.shape_cast %0 : vector<1x8x32xf32> to vector<8x32xf32>
    %c0_2 = arith.constant 0 : index
    %c0_3 = arith.constant 0 : index
    %2 = vector.load %arg2[%c0_2, %c0_3] : memref<1x32xf32, #tpu.memory_space<vmem>>, vector<1x32xf32>
    %c0_4 = arith.constant 0 : index
    %c0_5 = arith.constant 0 : index
    %3 = vector.load %arg3[%c0_4, %c0_5] : memref<1x32xf32, #tpu.memory_space<vmem>>, vector<1x32xf32>
    %cst = arith.constant dense<0.000000e+00> : vector<8xf32>
    %4 = vector.multi_reduction <add>, %1, %cst [1] : vector<8x32xf32> to vector<8xf32>
    %5 = vector.shape_cast %4 : vector<8xf32> to vector<8x1xf32>
    %cst_6 = arith.constant 3.200000e+01 : f32
    %6 = vector.broadcast %cst_6 : f32 to vector<8x1xf32>
    %7 = arith.divf %5, %6 : vector<8x1xf32>
    %8 = arith.mulf %1, %1 : vector<8x32xf32>
    %cst_7 = arith.constant dense<0.000000e+00> : vector<8xf32>
    %9 = vector.multi_reduction <add>, %8, %cst_7 [1] : vector<8x32xf32> to vector<8xf32>
    %10 = vector.shape_cast %9 : vector<8xf32> to vector<8x1xf32>
    %cst_8 = arith.constant 3.200000e+01 : f32
    %11 = vector.broadcast %cst_8 : f32 to vector<8x1xf32>
    %12 = arith.divf %10, %11 : vector<8x1xf32>
    %13 = arith.mulf %7, %7 : vector<8x1xf32>
    %14 = arith.subf %12, %13 : vector<8x1xf32>
    %cst_9 = arith.constant 0.000000e+00 : f32
    %15 = vector.broadcast %cst_9 : f32 to vector<8x1xf32>
    %16 = arith.maximumf %14, %15 : vector<8x1xf32>
    %17 = vector.broadcast %7 : vector<8x1xf32> to vector<8x32xf32>
    %18 = arith.subf %1, %17 : vector<8x32xf32>
    %cst_10 = arith.constant 9.99999974E-6 : f32
    %19 = vector.broadcast %cst_10 : f32 to vector<8x1xf32>
    %20 = arith.addf %16, %19 : vector<8x1xf32>
    %21 = math.rsqrt %20 : vector<8x1xf32>
    %22 = vector.broadcast %21 : vector<8x1xf32> to vector<8x32xf32>
    %23 = arith.mulf %18, %22 : vector<8x32xf32>
    %24 = vector.broadcast %2 : vector<1x32xf32> to vector<8x32xf32>
    %25 = arith.mulf %23, %24 : vector<8x32xf32>
    %26 = vector.broadcast %3 : vector<1x32xf32> to vector<8x32xf32>
    %27 = arith.addf %25, %26 : vector<8x32xf32>
    %c0_11 = arith.constant 0 : index
    %c0_12 = arith.constant 0 : index
    %28 = vector.load %arg4[%c0_11, %c0_12] : memref<32x96xf32, #tpu.memory_space<vmem>>, vector<32x96xf32>
    %cst_13 = arith.constant dense<0.000000e+00> : vector<8x96xf32>
    %29 = tpu.matmul %27, %28, %cst_13 {dimension_numbers = #tpu.dot_dimension_numbers<[1], [0], [0], [1], [0, 0, 1, 1], [], []>} : vector<8x32xf32>, vector<32x96xf32>, vector<8x96xf32> -> vector<8x96xf32>
    %30 = vector.extract_strided_slice %29 {offsets = [0, 0], sizes = [8, 8], strides = [1, 1]} : vector<8x96xf32> to vector<8x8xf32>
    %31 = vector.extract_strided_slice %29 {offsets = [0, 8], sizes = [8, 8], strides = [1, 1]} : vector<8x96xf32> to vector<8x8xf32>
    %32 = vector.extract_strided_slice %29 {offsets = [0, 16], sizes = [8, 8], strides = [1, 1]} : vector<8x96xf32> to vector<8x8xf32>
    %33 = vector.extract_strided_slice %29 {offsets = [0, 24], sizes = [8, 8], strides = [1, 1]} : vector<8x96xf32> to vector<8x8xf32>
    %34 = vector.shape_cast %30 : vector<8x8xf32> to vector<1x8x8xf32>
    %35 = vector.shape_cast %31 : vector<8x8xf32> to vector<1x8x8xf32>
    %36 = vector.shape_cast %32 : vector<8x8xf32> to vector<1x8x8xf32>
    %37 = vector.shape_cast %33 : vector<8x8xf32> to vector<1x8x8xf32>
    %38 = tpu.concatenate %34, %35, %36, %37 in 0 : vector<1x8x8xf32>, vector<1x8x8xf32>, vector<1x8x8xf32>, vector<1x8x8xf32> -> vector<4x8x8xf32>
    %39 = vector.extract_strided_slice %29 {offsets = [0, 32], sizes = [8, 8], strides = [1, 1]} : vector<8x96xf32> to vector<8x8xf32>
    %40 = vector.extract_strided_slice %29 {offsets = [0, 40], sizes = [8, 8], strides = [1, 1]} : vector<8x96xf32> to vector<8x8xf32>
    %41 = vector.extract_strided_slice %29 {offsets = [0, 48], sizes = [8, 8], strides = [1, 1]} : vector<8x96xf32> to vector<8x8xf32>
    %42 = vector.extract_strided_slice %29 {offsets = [0, 56], sizes = [8, 8], strides = [1, 1]} : vector<8x96xf32> to vector<8x8xf32>
    %43 = vector.shape_cast %39 : vector<8x8xf32> to vector<1x8x8xf32>
    %44 = vector.shape_cast %40 : vector<8x8xf32> to vector<1x8x8xf32>
    %45 = vector.shape_cast %41 : vector<8x8xf32> to vector<1x8x8xf32>
    %46 = vector.shape_cast %42 : vector<8x8xf32> to vector<1x8x8xf32>
    %47 = tpu.concatenate %43, %44, %45, %46 in 0 : vector<1x8x8xf32>, vector<1x8x8xf32>, vector<1x8x8xf32>, vector<1x8x8xf32> -> vector<4x8x8xf32>
    %48 = vector.extract_strided_slice %29 {offsets = [0, 64], sizes = [8, 8], strides = [1, 1]} : vector<8x96xf32> to vector<8x8xf32>
    %49 = vector.extract_strided_slice %29 {offsets = [0, 72], sizes = [8, 8], strides = [1, 1]} : vector<8x96xf32> to vector<8x8xf32>
    %50 = vector.extract_strided_slice %29 {offsets = [0, 80], sizes = [8, 8], strides = [1, 1]} : vector<8x96xf32> to vector<8x8xf32>
    %51 = vector.extract_strided_slice %29 {offsets = [0, 88], sizes = [8, 8], strides = [1, 1]} : vector<8x96xf32> to vector<8x8xf32>
    %52 = vector.shape_cast %48 : vector<8x8xf32> to vector<1x8x8xf32>
    %53 = vector.shape_cast %49 : vector<8x8xf32> to vector<1x8x8xf32>
    %54 = vector.shape_cast %50 : vector<8x8xf32> to vector<1x8x8xf32>
    %55 = vector.shape_cast %51 : vector<8x8xf32> to vector<1x8x8xf32>
    %56 = tpu.concatenate %52, %53, %54, %55 in 0 : vector<1x8x8xf32>, vector<1x8x8xf32>, vector<1x8x8xf32>, vector<1x8x8xf32> -> vector<4x8x8xf32>
    %cst_14 = arith.constant 0.353553385 : f32
    %57 = vector.broadcast %cst_14 : f32 to vector<4x8x8xf32>
    %58 = arith.mulf %38, %57 : vector<4x8x8xf32>
    "tpu.trace_start"() <{level = 10 : i32, message = "hnd,hmd->hnm"}> : () -> ()
    %cst_15 = arith.constant dense<0.000000e+00> : vector<4x8x8xf32>
    %59 = tpu.matmul %58, %47, %cst_15 {dimension_numbers = #tpu.dot_dimension_numbers<[2], [2], [1], [1], [0, 0, 0, 1, 1, 1], [0], [0]>} : vector<4x8x8xf32>, vector<4x8x8xf32>, vector<4x8x8xf32> -> vector<4x8x8xf32>
    "tpu.trace_stop"() : () -> ()
    %cst_16 = arith.constant dense<0xFF800000> : vector<4x8xf32>
    %60 = vector.multi_reduction <maximumf>, %59, %cst_16 [2] : vector<4x8x8xf32> to vector<4x8xf32>
    %61 = vector.shape_cast %60 : vector<4x8xf32> to vector<4x8x1xf32>
    %62 = vector.broadcast %61 : vector<4x8x1xf32> to vector<4x8x8xf32>
    %63 = arith.subf %59, %62 : vector<4x8x8xf32>
    %64 = math.exp %63 : vector<4x8x8xf32>
    %cst_17 = arith.constant dense<0.000000e+00> : vector<4x8xf32>
    %65 = vector.multi_reduction <add>, %64, %cst_17 [2] : vector<4x8x8xf32> to vector<4x8xf32>
    %66 = vector.shape_cast %65 : vector<4x8xf32> to vector<4x8x1xf32>
    %67 = tpu.reciprocal %66 {approx = true} : vector<4x8x1xf32> -> vector<4x8x1xf32>
    %68 = vector.broadcast %67 : vector<4x8x1xf32> to vector<4x8x8xf32>
    %69 = arith.mulf %64, %68 : vector<4x8x8xf32>
    "tpu.trace_start"() <{level = 10 : i32, message = "hnm,hmd->hnd"}> : () -> ()
    %cst_18 = arith.constant dense<0.000000e+00> : vector<4x8x8xf32>
    %70 = tpu.matmul %69, %56, %cst_18 {dimension_numbers = #tpu.dot_dimension_numbers<[2], [1], [1], [2], [0, 0, 0, 1, 1, 2], [0], [0]>} : vector<4x8x8xf32>, vector<4x8x8xf32>, vector<4x8x8xf32> -> vector<4x8x8xf32>
    "tpu.trace_stop"() : () -> ()
    %c0_19 = arith.constant 0 : index
    %c0_20 = arith.constant 0 : index
    %c0_21 = arith.constant 0 : index
    %71 = vector.load %arg5[%c0_19, %c0_20, %c0_21] : memref<4x8x32xf32, #tpu.memory_space<vmem>>, vector<4x8x32xf32>
    "tpu.trace_start"() <{level = 10 : i32, message = "hnd,hdc->hnc"}> : () -> ()
    %cst_22 = arith.constant dense<0.000000e+00> : vector<4x8x32xf32>
    %72 = tpu.matmul %70, %71, %cst_22 {dimension_numbers = #tpu.dot_dimension_numbers<[2], [1], [1], [2], [0, 0, 0, 1, 1, 2], [0], [0]>} : vector<4x8x8xf32>, vector<4x8x32xf32>, vector<4x8x32xf32> -> vector<4x8x32xf32>
    "tpu.trace_stop"() : () -> ()
    %cst_23 = arith.constant dense<0.000000e+00> : vector<8x32xf32>
    %73 = vector.multi_reduction <add>, %72, %cst_23 [0] : vector<4x8x32xf32> to vector<8x32xf32>
    %c0_24 = arith.constant 0 : index
    %c0_25 = arith.constant 0 : index
    %74 = vector.load %arg6[%c0_24, %c0_25] : memref<1x32xf32, #tpu.memory_space<vmem>>, vector<1x32xf32>
    %75 = vector.broadcast %74 : vector<1x32xf32> to vector<8x32xf32>
    %76 = arith.addf %73, %75 : vector<8x32xf32>
    %77 = arith.addf %1, %76 : vector<8x32xf32>
    %c0_26 = arith.constant 0 : index
    %c0_27 = arith.constant 0 : index
    %78 = vector.load %arg7[%c0_26, %c0_27] : memref<1x32xf32, #tpu.memory_space<vmem>>, vector<1x32xf32>
    %c0_28 = arith.constant 0 : index
    %c0_29 = arith.constant 0 : index
    %79 = vector.load %arg8[%c0_28, %c0_29] : memref<1x32xf32, #tpu.memory_space<vmem>>, vector<1x32xf32>
    %cst_30 = arith.constant dense<0.000000e+00> : vector<8xf32>
    %80 = vector.multi_reduction <add>, %77, %cst_30 [1] : vector<8x32xf32> to vector<8xf32>
    %81 = vector.shape_cast %80 : vector<8xf32> to vector<8x1xf32>
    %cst_31 = arith.constant 3.200000e+01 : f32
    %82 = vector.broadcast %cst_31 : f32 to vector<8x1xf32>
    %83 = arith.divf %81, %82 : vector<8x1xf32>
    %84 = arith.mulf %77, %77 : vector<8x32xf32>
    %cst_32 = arith.constant dense<0.000000e+00> : vector<8xf32>
    %85 = vector.multi_reduction <add>, %84, %cst_32 [1] : vector<8x32xf32> to vector<8xf32>
    %86 = vector.shape_cast %85 : vector<8xf32> to vector<8x1xf32>
    %cst_33 = arith.constant 3.200000e+01 : f32
    %87 = vector.broadcast %cst_33 : f32 to vector<8x1xf32>
    %88 = arith.divf %86, %87 : vector<8x1xf32>
    %89 = arith.mulf %83, %83 : vector<8x1xf32>
    %90 = arith.subf %88, %89 : vector<8x1xf32>
    %cst_34 = arith.constant 0.000000e+00 : f32
    %91 = vector.broadcast %cst_34 : f32 to vector<8x1xf32>
    %92 = arith.maximumf %90, %91 : vector<8x1xf32>
    %93 = vector.broadcast %83 : vector<8x1xf32> to vector<8x32xf32>
    %94 = arith.subf %77, %93 : vector<8x32xf32>
    %cst_35 = arith.constant 9.99999974E-6 : f32
    %95 = vector.broadcast %cst_35 : f32 to vector<8x1xf32>
    %96 = arith.addf %92, %95 : vector<8x1xf32>
    %97 = math.rsqrt %96 : vector<8x1xf32>
    %98 = vector.broadcast %97 : vector<8x1xf32> to vector<8x32xf32>
    %99 = arith.mulf %94, %98 : vector<8x32xf32>
    %100 = vector.broadcast %78 : vector<1x32xf32> to vector<8x32xf32>
    %101 = arith.mulf %99, %100 : vector<8x32xf32>
    %102 = vector.broadcast %79 : vector<1x32xf32> to vector<8x32xf32>
    %103 = arith.addf %101, %102 : vector<8x32xf32>
    %c0_36 = arith.constant 0 : index
    %c0_37 = arith.constant 0 : index
    %104 = vector.load %arg9[%c0_36, %c0_37] : memref<32x128xf32, #tpu.memory_space<vmem>>, vector<32x128xf32>
    %cst_38 = arith.constant dense<0.000000e+00> : vector<8x128xf32>
    %105 = tpu.matmul %103, %104, %cst_38 {dimension_numbers = #tpu.dot_dimension_numbers<[1], [0], [0], [1], [0, 0, 1, 1], [], []>} : vector<8x32xf32>, vector<32x128xf32>, vector<8x128xf32> -> vector<8x128xf32>
    %c0_39 = arith.constant 0 : index
    %c0_40 = arith.constant 0 : index
    %106 = vector.load %arg10[%c0_39, %c0_40] : memref<1x128xf32, #tpu.memory_space<vmem>>, vector<1x128xf32>
    %107 = vector.broadcast %106 : vector<1x128xf32> to vector<8x128xf32>
    %108 = arith.addf %105, %107 : vector<8x128xf32>
    %cst_41 = arith.constant 5.000000e-01 : f32
    %109 = vector.broadcast %cst_41 : f32 to vector<8x128xf32>
    %110 = arith.mulf %109, %108 : vector<8x128xf32>
    %cst_42 = arith.constant 0.707106769 : f32
    %111 = vector.broadcast %cst_42 : f32 to vector<8x128xf32>
    %112 = arith.mulf %108, %111 : vector<8x128xf32>
    %113 = math.erf %112 : vector<8x128xf32>
    %cst_43 = arith.constant 1.000000e+00 : f32
    %114 = vector.broadcast %cst_43 : f32 to vector<8x128xf32>
    %115 = arith.addf %114, %113 : vector<8x128xf32>
    %116 = arith.mulf %110, %115 : vector<8x128xf32>
    %c0_44 = arith.constant 0 : index
    %c0_45 = arith.constant 0 : index
    %117 = vector.load %arg11[%c0_44, %c0_45] : memref<128x32xf32, #tpu.memory_space<vmem>>, vector<128x32xf32>
    %cst_46 = arith.constant dense<0.000000e+00> : vector<8x32xf32>
    %118 = tpu.matmul %116, %117, %cst_46 {dimension_numbers = #tpu.dot_dimension_numbers<[1], [0], [0], [1], [0, 0, 1, 1], [], []>} : vector<8x128xf32>, vector<128x32xf32>, vector<8x32xf32> -> vector<8x32xf32>
    %c0_47 = arith.constant 0 : index
    %c0_48 = arith.constant 0 : index
    %119 = vector.load %arg12[%c0_47, %c0_48] : memref<1x32xf32, #tpu.memory_space<vmem>>, vector<1x32xf32>
    %120 = vector.broadcast %119 : vector<1x32xf32> to vector<8x32xf32>
    %121 = arith.addf %118, %120 : vector<8x32xf32>
    %122 = arith.addf %77, %121 : vector<8x32xf32>
    %c0_49 = arith.constant 0 : index
    %c0_50 = arith.constant 0 : index
    %c0_51 = arith.constant 0 : index
    %123 = vector.load %arg13[%c0_49, %c0_50, %c0_51] : memref<1x8x32xf32, #tpu.memory_space<vmem>>, vector<1x8x32xf32>
    %124 = vector.shape_cast %123 : vector<1x8x32xf32> to vector<8x32xf32>
    %125 = vector.shape_cast %122 : vector<8x32xf32> to vector<1x8x32xf32>
    tpu.vector_store %arg13[%c0_49, %c0_50, %c0_51], %125 {strides = array<i32>} : memref<1x8x32xf32, #tpu.memory_space<vmem>>, vector<1x8x32xf32>,
    return
  }
  func.func @transform_0(%arg0: i32) -> (i32, i32, i32) {
    %c0_i32 = arith.constant 0 : i32
    %c0_i32_0 = arith.constant 0 : i32
    %c0_i32_1 = arith.constant 0 : i32
    return %arg0, %c0_i32, %c0_i32_0 : i32, i32, i32
  }
  func.func @transform_1(%arg0: i32) -> (i32, i32) {
    %c0_i32 = arith.constant 0 : i32
    %c0_i32_0 = arith.constant 0 : i32
    %c0_i32_1 = arith.constant 0 : i32
    return %c0_i32, %c0_i32_0 : i32, i32
  }
  func.func @transform_2(%arg0: i32) -> (i32, i32) {
    %c0_i32 = arith.constant 0 : i32
    %c0_i32_0 = arith.constant 0 : i32
    %c0_i32_1 = arith.constant 0 : i32
    return %c0_i32, %c0_i32_0 : i32, i32
  }
  func.func @transform_3(%arg0: i32) -> (i32, i32) {
    %c0_i32 = arith.constant 0 : i32
    %c0_i32_0 = arith.constant 0 : i32
    %c0_i32_1 = arith.constant 0 : i32
    return %c0_i32, %c0_i32_0 : i32, i32
  }
  func.func @transform_4(%arg0: i32) -> (i32, i32, i32) {
    %c0_i32 = arith.constant 0 : i32
    %c0_i32_0 = arith.constant 0 : i32
    %c0_i32_1 = arith.constant 0 : i32
    %c0_i32_2 = arith.constant 0 : i32
    return %c0_i32, %c0_i32_0, %c0_i32_1 : i32, i32, i32
  }
  func.func @transform_5(%arg0: i32) -> (i32, i32) {
    %c0_i32 = arith.constant 0 : i32
    %c0_i32_0 = arith.constant 0 : i32
    %c0_i32_1 = arith.constant 0 : i32
    return %c0_i32, %c0_i32_0 : i32, i32
  }
  func.func @transform_6(%arg0: i32) -> (i32, i32) {
    %c0_i32 = arith.constant 0 : i32
    %c0_i32_0 = arith.constant 0 : i32
    %c0_i32_1 = arith.constant 0 : i32
    return %c0_i32, %c0_i32_0 : i32, i32
  }
  func.func @transform_7(%arg0: i32) -> (i32, i32) {
    %c0_i32 = arith.constant 0 : i32
    %c0_i32_0 = arith.constant 0 : i32
    %c0_i32_1 = arith.constant 0 : i32
    return %c0_i32, %c0_i32_0 : i32, i32
  }
  func.func @transform_8(%arg0: i32) -> (i32, i32) {
    %c0_i32 = arith.constant 0 : i32
    %c0_i32_0 = arith.constant 0 : i32
    %c0_i32_1 = arith.constant 0 : i32
    return %c0_i32, %c0_i32_0 : i32, i32
  }
  func.func @transform_9(%arg0: i32) -> (i32, i32) {
    %c0_i32 = arith.constant 0 : i32
    %c0_i32_0 = arith.constant 0 : i32
    %c0_i32_1 = arith.constant 0 : i32
    return %c0_i32, %c0_i32_0 : i32, i32
  }
  func.func @transform_10(%arg0: i32) -> (i32, i32) {
    %c0_i32 = arith.constant 0 : i32
    %c0_i32_0 = arith.constant 0 : i32
    %c0_i32_1 = arith.constant 0 : i32
    return %c0_i32, %c0_i32_0 : i32, i32
  }
  func.func @transform_11(%arg0: i32) -> (i32, i32) {
    %c0_i32 = arith.constant 0 : i32
    %c0_i32_0 = arith.constant 0 : i32
    %c0_i32_1 = arith.constant 0 : i32
    return %c0_i32, %c0_i32_0 : i32, i32
  }
  func.func @transform_12(%arg0: i32) -> (i32, i32, i32) {
    %c0_i32 = arith.constant 0 : i32
    %c0_i32_0 = arith.constant 0 : i32
    %c0_i32_1 = arith.constant 0 : i32
    return %arg0, %c0_i32, %c0_i32_0 : i32, i32, i32
  }
}

</mosaic_0001>

<bundles_post_ra>
// kernel: tpu_custom_call.1
= control target key start
LH: loop header
LB: loop body
LE: loop exit
PB: predicated region body
PF: predicated region fallthrough
CT: control target
= control target key end

     0   :  { %s2525_s0 = inlined_call_operand.vmem [shape: f32[2,8,32], index: 0, kind: input, shape index: {}]   ;;  %s2526_s1 = inlined_call_operand.vmem [shape: f32[1,32], index: 1, kind: input, shape index: {}]   ;;  %s2527_s2 = inlined_call_operand.vmem [shape: f32[1,32], index: 2, kind: input, shape index: {}]   ;;  %s2528_s3 = inlined_call_operand.vmem [shape: f32[32,96], index: 3, kind: input, shape index: {}]   ;;  %s2529_s4 = inlined_call_operand.vmem [shape: f32[4,8,32], index: 4, kind: input, shape index: {}]   ;;  %s2530_s5 = inlined_call_operand.vmem [shape: f32[1,32], index: 5, kind: input, shape index: {}]   ;;  %s2531_s6 = inlined_call_operand.vmem [shape: f32[1,32], index: 6, kind: input, shape index: {}]   ;;  %s2532_s7 = inlined_call_operand.vmem [shape: f32[1,32], index: 7, kind: input, shape index: {}]   ;;  %s2533_s8 = inlined_call_operand.vmem [shape: f32[32,128], index: 8, kind: input, shape index: {}]   ;;  %s2534_s9 = inlined_call_operand.vmem [shape: f32[1,128], index: 9, kind: input, shape index: {}]   ;;  %s2535_s10 = inlined_call_operand.vmem [shape: f32[128,32], index: 10, kind: input, shape index: {}]   ;;  %s2536_s11 = inlined_call_operand.vmem [shape: f32[1,32], index: 11, kind: input, shape index: {}]   ;;  %s2537_s12 = inlined_call_operand.hbm [shape: f32[2,8,32], index: 12, kind: output, shape index: {}]  }
   0x1   :  { %2538 = sst [smem:[#allocation5_spill]] %s2525_s0 }
   0x2   :  { %2539 = sst [smem:[#allocation6_spill]] %s2526_s1 }
   0x3   :  { %2540 = sst [smem:[#allocation7_spill]] %s2527_s2 }
   0x4   :  { %17 = vsyncpa [#allocation3], 0 }
   0x5   :  { %19 = vsyncpa [#allocation3 + $0x1], 0  ;;  %s2199_s21 = smov 0   ;;  %s2201_s22 = smov 0  }
   0x6   :  { %s2203_s23 = smov 0   ;;  %s2205_s24 = smov 0  }
   0x7 LB: > { %s2220_s25 = sadd.s32 4294967295, %s2124_s24   ;;  %s1793_s26 = sadd.s32 4294967294, %s2124_s24   ;;  %s2124_s24 = sphi %s2205_s24, %s2549_s24   ;;  %s2120_s23 = sphi %s2203_s23, %s2548_s23   ;;  %s2116_s22 = sphi %s2201_s22, %s2547_s22   ;;  %s2112_s21 = sphi %s2199_s21, %s2546_s21  }
   0x8   : > { %s2224_s27 = sadd.s32 1, %s2124_s24   ;;  %s289_s28 = sadd.s32 1, %s2120_s23 }
   0x9   : > { %s286_s29 = ssub.s32 %s2124_s24, %s2224_s27  ;;  %p299_p0 = scmp.ne.s32.totalorder %s2120_s23, %s2116_s22 }
   0xa   : > { %p287_p1 = scmp.eq.s32.totalorder %s286_s29, 0  ;;  %p300_p2 = scmp.eq.s32.totalorder %s2220_s25, 1 }
   0xb   : > { %p305_p3 = scmp.ne.s32.totalorder %s2116_s22, %s2112_s21  ;;  %p306_p4 = scmp.eq.s32.totalorder %s1793_s26, 1 }
   0xc   : > { %s2235_s30 = scalar_select %p287_p1, %s2120_s23, %s289_s28  }
   0xd   : > { %p2237_p5 = por %p300_p2, %p299_p0  ;;  %p2241_p6 = por %p306_p4, %p305_p3 }
   0xe   : > { %p1796_p7 = scmp.ge.s32.totalorder %s2124_s24, 1  ;;  %p364_p8 = scmp.lt.s32.totalorder %s2124_s24, 3 }
  0x10   : > { %p365_p9 = pnand %p1796_p7, %p364_p8 }
  0x11   : > { %p405_p10 = scmp.lt.s32.totalorder (!%p365_p9), %s2220_s25, 1  ;;  %s2543_s0 = sld [smem:[#allocation5_spill]] (!%p365_p9) }
  0x12   : > { %368 = sbr.rel (%p365_p9) target bundleno = 2125 (0x84d), region = 68  ;;  %s2544_s1 = sld [smem:[#allocation6_spill]] (!%p365_p9) }
  0x13   : > { %s2545_s2 = sld [smem:[#allocation7_spill]] (!%p365_p9)  ;;  %s2128_s29 = smov (!%p365_p9), 104  }
  0x14   : > { %s2131_s17 = smov (!%p365_p9), 96   ;;  %s2132_s18 = smov (!%p365_p9), 64  }
  0x15   : > { %s402_s26 = sand.u32 (!%p365_p9), 1, %s2116_s22  }
  0x16   : > { %s1797_s28 = sshll.u32 (!%p365_p9), %s402_s26, 3 }
  0x17   : > { %s406_s15 = scalar_select %p405_p10, %s2220_s25, 1  ;;  %vm412_vm0 = vcmask 261120   ;;  %v447_v4 = vld [vmem:[%s2528_s3 + $0x18] sm:$0xff]  ;;  %v2126_v5 = vmov 0.0   ;;  %v446_v6 = vld [vmem:[%s2528_s3 + $0x10] sm:$0xff]  ;;  %vm2127_vm1 = vmmov 0  }
  0x18   : > { %1879 = vmatprep.subr.mxu0 %v2126_v5  ;;  %1887 = vmatprep.mubr.msk.f32.mxu0 %vm2127_vm1, %v2126_v5  ;;  %v445_v7 = vld [vmem:[%s2528_s3 + $0x8] sm:$0xff]  ;;  %v444_v8 = vld [vmem:[%s2528_s3] sm:$0xff]  ;;  %vm537_vm2 = vcmask 64512  }
  0x19   : > { %s1798_s16 = sshll.u32 %s406_s15, 3  ;;  %1880 = vmatpush3.msra.mxu0 %v447_v4  ;;  %1915 = vmatprep.subr.mxu1 %v2126_v5  ;;  %v1799_v19 = vld [vmem:[%s2544_s1] ss:$0 sm:$0xff]  ;;  %s2129_s15 = smov 120  }
  0x1a   : > { %s408_s19 = scalar_lea.vmem %s2543_s0, %s1798_s16  ;;  %1881 = vmatprep.subr.mxu0 %v2126_v5  ;;  %1917 = vmatprep.mubr.msk.f32.mxu1 %vm2127_vm1, %v2126_v5  ;;  %v1800_v21 = vld [vmem:[%s2545_s2] ss:$0 sm:$0xff]  ;;  %s2130_s16 = smov 112  }
  0x1b   : > { %v2252_v0 = vld [vmem:[%s408_s19] sm:$0xff]  ;;  %1882 = vmatpush3.msra.mxu0 %v446_v6  ;;  %s1721_s1 = scalar_lea.sflag [#allocation3], %s402_s26 }
  0x1c   : > { %v413_v1 = vsel %vm412_vm0, %v2252_v0, 0.0  ;;  %v418_v2 = vmul.f32 %v2252_v0, %v2252_v0  ;;  %1883 = vmatprep.subr.mxu0 %v2126_v5 }
  0x1d   : > { %414 = vadd.xlane.f32.xlu0 %v413_v1  ;;  %1884 = vmatpush3.msra.mxu0 %v445_v7 }
  0x1e   : > { %v419_v3 = vsel %vm412_vm0, %v418_v2, 0.0  ;;  %1885 = vmatprep.subr.mxu0 %v2126_v5 }
  0x1f   : > { %1886 = vmatpush3.msra.mxu0 %v444_v8 }
  0x20   : > { %1890 = vmatprep.subr.mxu0 %v2126_v5 }
  0x21   : > { %420 = vadd.xlane.f32.xlu0 %v419_v3 }
  0xa6   : > { %v415_v9 = vpop.xlane.xlu0 %414 }
  0xa7   : > { %v417_v10 = vmul.f32 0.03125, %v415_v9 }
  0xa9   : > { %v423_v12 = vmul.f32 %v417_v10, %v417_v10  ;;  %v426_v17 = vsub.f32 %v2252_v0, %v417_v10 }
  0xaa   : > { %v421_v11 = vpop.xlane.xlu0 %420 }
  0xab   : > { %v422_v13 = vmul.f32 0.03125, %v421_v11 }
  0xad   : > { %v424_v14 = vsub.f32 %v422_v13, %v423_v12 }
  0xaf   : > { %v425_v15 = vmax.f32 %v424_v14, 0.0 }
  0xb1   : > { %v427_v16 = vadd.f32 1e-05, %v425_v15 }
  0xb3   : > { %2042 = vrsqrt.f32 %v427_v16 }
  0xc0   : > { %v2043_v18 = vpop.eup %2042 }
  0xc1   : > { %v429_v20 = vmul.f32 %v2043_v18, %v426_v17 }
  0xc3   : > { %v436_v22 = vmul.f32 %v1799_v19, %v429_v20 }
  0xc5   : > { %v443_v23 = vadd.f32 %v1800_v21, %v436_v22  ;;  %v1192_v21 = vld [vmem:[%s2529_s4] sm:$0xff] }
  0xc7   : > { %1888 = vmatmul.mubr.msk.f32.vlgmr.msra.gmra.mxu0 %vm412_vm0, %v443_v23 }
  0xc8   : > { %1892 = vmatprep.mubr.msk.f32.mxu0 %vm2127_vm1, %v2126_v5 }
 0x187   : > { %v517_v24 = vpop.f32.mrf.mxu0 }
 0x188   : > { %528 = vrot.lane.b32.xlu0 %v517_v24, %s2128_s29  ;;  %522 = vrot.lane.b32.xlu1 %v517_v24, %s2129_s15  ;;  %v531_v30 = vmul.f32 0.35355338, %v517_v24 }
 0x189   : > { %v1889_v25 = vpop.f32.mrf.mxu0 }
 0x18a   : > { %v1194_v25 = vld [vmem:[%s2529_s4 + $0x10] sm:$0xff] }
 0x18c   : > { %525 = vrot.lane.b32.xlu1 %v517_v24, %s2130_s16  ;;  %s1825_s16 = sshll.u32 %s2220_s25, 7  ;;  %s2133_s25 = smov [#allocation2]  }
 0x18d   : > { %s1732_s0 = scalar_lea.hbm %s2537_s12, %s1825_s16 }
 0x190   : > { %535 = vrot.lane.b32.xlu1 %v517_v24, %s2131_s17 }
 0x1fa   : > { %v2291_v26 = vpop.permute.xlu1 %522  ;;  %v2297_v28 = vpop.permute.xlu0 %528 }
 0x1fb   : > { %613 = vrot.lane.b32.xlu1 %v2291_v26, %s2131_s17  ;;  %v532_v32 = vmul.f32 0.35355338, %v2291_v26  ;;  %v534_v36 = vmul.f32 0.35355338, %v2297_v28 }
 0x1fe   : > { %v2294_v27 = vpop.permute.xlu1 %525 }
 0x1ff   : > { %690 = vrot.lane.b32.xlu1 %v2294_v27, %s2131_s17  ;;  %v533_v34 = vmul.f32 0.35355338, %v2294_v27 }
 0x202   : > { %v536_v29 = vpop.permute.xlu1 %535 }
 0x203   : > { %767 = vrot.lane.b32.xlu1 %v2297_v28, %s2131_s17  ;;  %1891 = vmatpush3.xpose.msk.msra.mxu0 %vm537_vm2, %v536_v29  ;;  %s404_s17 = scalar_lea.vmem [#allocation2], %s1797_s28  ;;  %s2068_s28 = sshll.u32 %s2133_s25, 4  ;;  %s2069_s28 = int_to_ptr.vmem [resolvable:$false] %s2068_s28 }
 0x204   : > { %1895 = vmatprep.subr.mxu0 %v2126_v5  ;;  %s2070_s29 = scalar_lea.vmem %s2069_s28, 256 }
 0x206   : > { %1893 = vmatmul.mubr.msk.f32.vlgmr.msra.gmra.mxu0 %vm537_vm2, %v531_v30 }
 0x207   : > { %1897 = vmatprep.mubr.msk.f32.mxu0 %vm2127_vm1, %v2126_v5 }
 0x26d   : > { %v614_v31 = vpop.permute.xlu1 %613 }
 0x26e   : > { %1896 = vmatpush3.xpose.msk.msra.mxu0 %vm537_vm2, %v614_v31 }
 0x26f   : > { %1900 = vmatprep.subr.mxu0 %v2126_v5 }
 0x271   : > { %v691_v33 = vpop.permute.xlu1 %690  ;;  %1898 = vmatmul.mubr.msk.f32.vlgmr.msra.gmra.mxu0 %vm537_vm2, %v532_v32 }
 0x272   : > { %1901 = vmatpush3.xpose.msk.msra.mxu0 %vm537_vm2, %v691_v33  ;;  %1902 = vmatprep.mubr.msk.f32.mxu0 %vm2127_vm1, %v2126_v5 }
 0x273   : > { %1905 = vmatprep.subr.mxu0 %v2126_v5 }
 0x275   : > { %v768_v35 = vpop.permute.xlu1 %767  ;;  %1903 = vmatmul.mubr.msk.f32.vlgmr.msra.gmra.mxu0 %vm537_vm2, %v533_v34 }
 0x276   : > { %1906 = vmatpush3.xpose.msk.msra.mxu0 %vm537_vm2, %v768_v35  ;;  %1907 = vmatprep.mubr.msk.f32.mxu0 %vm2127_vm1, %v2126_v5 }
 0x277   : > { %1910 = vmatprep.subr.mxu0 %v2126_v5 }
 0x279   : > { %1908 = vmatmul.mubr.msk.f32.vlgmr.msra.gmra.mxu0 %vm537_vm2, %v534_v36 }
 0x27a   : > { %1912 = vmatprep.mubr.msk.f32.mxu0 %vm2127_vm1, %v2126_v5 }
 0x2c6   : > { %v609_v37 = vpop.f32.mrf.mxu0 }
 0x2c7   : > { %v844_v38 = vsel %vm537_vm2, %v609_v37, -inf }
 0x2c8   : > { %845 = vmax.xlane.f32.xlu1 %v844_v38  ;;  %v1894_v39 = vpop.f32.mrf.mxu0 }
 0x331   : > { %v686_v40 = vpop.f32.mrf.mxu0 }
 0x332   : > { %v847_v41 = vsel %vm537_vm2, %v686_v40, -inf }
 0x333   : > { %848 = vmax.xlane.f32.xlu0 %v847_v41  ;;  %v1899_v42 = vpop.f32.mrf.mxu0 }
 0x335   : > { %v763_v43 = vpop.f32.mrf.mxu0 }
 0x336   : > { %v850_v44 = vsel %vm537_vm2, %v763_v43, -inf }
 0x337   : > { %851 = vmax.xlane.f32.xlu1 %v850_v44  ;;  %v1904_v45 = vpop.f32.mrf.mxu0 }
 0x339   : > { %v840_v46 = vpop.f32.mrf.mxu0 }
 0x33a   : > { %v853_v47 = vsel %vm537_vm2, %v840_v46, -inf }
 0x33b   : > { %854 = vmax.xlane.f32.xlu0 %v853_v47  ;;  %v1909_v48 = vpop.f32.mrf.mxu0 }
 0x33c   : > { %v1818_v48 = vld [vmem:[%s2530_s5] ss:$0 sm:$0xff] }
 0x348   : > { %888 = vrot.lane.b32.xlu1 %v517_v24, %s2132_s18  ;;  %v1193_v24 = vld [vmem:[%s2529_s4 + $0x8] sm:$0xff] }
 0x351   : > { %v846_v49 = vpop.xlane.xlu1 %845 }
 0x352   : > { %v856_v50 = vsub.f32 %v609_v37, %v846_v49 }
 0x354   : > { %v860_v51 = vmul.f32 1.442695, %v856_v50 }
 0x356   : > { %2044 = vpow2.f32 %v860_v51 }
 0x363   : > { %v2045_v52 = vpop.eup %2044 }
 0x364   : > { %v868_v53 = vsel %vm537_vm2, %v2045_v52, 0.0 }
 0x36c   : > { %869 = vadd.xlane.f32.xlu1 %v868_v53 }
 0x3bc   : > { %v849_v54 = vpop.xlane.xlu0 %848 }
 0x3bd   : > { %v857_v55 = vsub.f32 %v686_v40, %v849_v54 }
 0x3bf   : > { %v862_v56 = vmul.f32 1.442695, %v857_v55 }
 0x3c0   : > { %v852_v57 = vpop.xlane.xlu1 %851 }
 0x3c1   : > { %2046 = vpow2.f32 %v862_v56  ;;  %v858_v58 = vsub.f32 %v763_v43, %v852_v57  ;;  %v1539_v56 = vld [vmem:[%s2533_s8 + $0x18] sm:$0xff]  ;;  %v1538_v57 = vld [vmem:[%s2533_s8 + $0x10] sm:$0xff] }
 0x3c3   : > { %v864_v59 = vmul.f32 1.442695, %v858_v58  ;;  %v1536_v58 = vld [vmem:[%s2533_s8] sm:$0xff] }
 0x3c4   : > { %v889_v60 = vpop.permute.xlu1 %888  ;;  %v855_v61 = vpop.xlane.xlu0 %854 }
 0x3c5   : > { %2048 = vpow2.f32 %v864_v59  ;;  %v859_v62 = vsub.f32 %v840_v46, %v855_v61  ;;  %1911 = vmatpush3.msra.mxu0 %v889_v60  ;;  %v1640_v59 = vld [vmem:[%s2535_s10 + $0x78] sm:$0xff]  ;;  %v1639_v60 = vld [vmem:[%s2535_s10 + $0x70] sm:$0xff]  ;;  %v1638_v61 = vld [vmem:[%s2535_s10 + $0x68] sm:$0xff] }
 0x3c6   : > { %1920 = vmatprep.subr.mxu0 %v2126_v5 }
 0x3c7   : > { %v866_v63 = vmul.f32 1.442695, %v859_v62  ;;  %v1637_v62 = vld [vmem:[%s2535_s10 + $0x60] sm:$0xff] }
 0x3c9   : > { %2050 = vpow2.f32 %v866_v63 }
 0x3ce   : > { %v2047_v1 = vpop.eup %2046 }
 0x3cf   : > { %v871_v2 = vsel %vm537_vm2, %v2047_v1, 0.0 }
 0x3d0   : > { %872 = vadd.xlane.f32.xlu0 %v871_v2 }
 0x3d2   : > { %v2049_v3 = vpop.eup %2048 }
 0x3d3   : > { %v874_v4 = vsel %vm537_vm2, %v2049_v3, 0.0 }
 0x3d4   : > { %875 = vadd.xlane.f32.xlu1 %v874_v4 }
 0x3d6   : > { %v2051_v6 = vpop.eup %2050 }
 0x3d7   : > { %v877_v7 = vsel %vm537_vm2, %v2051_v6, 0.0 }
 0x3d8   : > { %878 = vadd.xlane.f32.xlu0 %v877_v7 }
 0x3e5   : > { %1040 = vrot.lane.b32.xlu1 %v2294_v27, %s2132_s18 }
 0x3e9   : > { %1116 = vrot.lane.b32.xlu1 %v2297_v28, %s2132_s18  ;;  %v1195_v28 = vld [vmem:[%s2529_s4 + $0x18] sm:$0xff] }
 0x3ee   : > { %964 = vrot.lane.b32.xlu0 %v2291_v26, %s2132_s18  ;;  %s1734_s18 = sshll.u32 %s404_s17, 4  ;;  %s1735_s18 = int_to_ptr.vmem [resolvable:$true] %s1734_s18 }
 0x3ef   : > { %s2064_s2 = scalar_lea.vmem %s1735_s18, 128  ;;  %p2071_p0 = scmp.lt.s32.totalorder %s1735_s18, %s2069_s28 }
 0x3f0   : > { %p2065_p11 = scmp.ne.s32.totalorder %s1735_s18, %s2064_s2  ;;  %p2072_p1 = scmp.lt.s32.totalorder %s2070_s29, %s2064_s2 }
 0x3f2   : > { %p2066_p12 = pnand %p2065_p11, %p2237_p5  ;;  %p2073_p2 = por %p2072_p1, %p2071_p0 }
 0x3f4   : > { %p2067_p13 = pneg %p2066_p12 }
 0x3f5   : > { %v870_v8 = vpop.xlane.xlu1 %869 }
 0x3f6   : > { %2052 = vrcp.f32 %v870_v8  ;;  %p2074_p3 = pnand %p2073_p2, %p2067_p13 }
 0x403   : > { %v2053_v9 = vpop.eup %2052 }
 0x404   : > { %v884_v10 = vmul.f32 %v2053_v9, %v2045_v52 }
 0x406   : > { %1913 = vmatmul.mubr.msk.f32.vlgmr.msra.gmra.mxu0 %vm537_vm2, %v884_v10 }
 0x407   : > { %1922 = vmatprep.mubr.msk.f32.mxu0 %vm2127_vm1, %v2126_v5 }
 0x459   : > { %v873_v11 = vpop.xlane.xlu0 %872 }
 0x45a   : > { %2054 = vrcp.f32 %v873_v11  ;;  %v1819_v11 = vld [vmem:[%s2531_s6] ss:$0 sm:$0xff] }
 0x45d   : > { %v876_v12 = vpop.xlane.xlu1 %875 }
 0x45e   : > { %2056 = vrcp.f32 %v876_v12 }
 0x461   : > { %v1041_v13 = vpop.permute.xlu1 %1040  ;;  %v879_v14 = vpop.xlane.xlu0 %878 }
 0x462   : > { %2058 = vrcp.f32 %v879_v14  ;;  %1921 = vmatpush3.msra.mxu0 %v1041_v13  ;;  %v1820_v13 = vld [vmem:[%s2532_s7] ss:$0 sm:$0xff] }
 0x463   : > { %1930 = vmatprep.subr.mxu0 %v2126_v5 }
 0x465   : > { %v965_v15 = vpop.permute.xlu0 %964  ;;  %v1117_v18 = vpop.permute.xlu1 %1116 }
 0x466   : > { %1916 = vmatpush3.msra.mxu1 %v965_v15 }
 0x467   : > { %v2055_v16 = vpop.eup %2054  ;;  %1925 = vmatprep.subr.mxu1 %v2126_v5 }
 0x468   : > { %v885_v17 = vmul.f32 %v2055_v16, %v2047_v1  ;;  %v1636_v16 = vld [vmem:[%s2535_s10 + $0x58] sm:$0xff] }
 0x46a   : > { %1918 = vmatmul.mubr.msk.f32.vlgmr.msra.gmra.mxu1 %vm537_vm2, %v885_v17  ;;  %v1635_v17 = vld [vmem:[%s2535_s10 + $0x50] sm:$0xff] }
 0x46b   : > { %v2057_v19 = vpop.eup %2056  ;;  %1926 = vmatpush3.msra.mxu1 %v1117_v18  ;;  %1927 = vmatprep.mubr.msk.f32.mxu1 %vm2127_vm1, %v2126_v5  ;;  %v1634_v18 = vld [vmem:[%s2535_s10 + $0x48] sm:$0xff] }
 0x46c   : > { %v886_v20 = vmul.f32 %v2057_v19, %v2049_v3  ;;  %1935 = vmatprep.subr.mxu1 %v2126_v5  ;;  %v1633_v19 = vld [vmem:[%s2535_s10 + $0x40] sm:$0xff] }
 0x46e   : > { %1923 = vmatmul.mubr.msk.f32.vlgmr.msra.gmra.mxu0 %vm537_vm2, %v886_v20  ;;  %v1632_v20 = vld [vmem:[%s2535_s10 + $0x38] sm:$0xff] }
 0x46f   : > { %v2059_v22 = vpop.eup %2058  ;;  %1931 = vmatpush3.msra.mxu0 %v1192_v21  ;;  %1932 = vmatprep.mubr.msk.f32.mxu0 %vm2127_vm1, %v2126_v5  ;;  %v1631_v21 = vld [vmem:[%s2535_s10 + $0x30] sm:$0xff] }
 0x470   : > { %v887_v23 = vmul.f32 %v2059_v22, %v2051_v6  ;;  %1940 = vmatprep.subr.mxu0 %v2126_v5  ;;  %v1630_v22 = vld [vmem:[%s2535_s10 + $0x28] sm:$0xff] }
 0x472   : > { %1928 = vmatmul.mubr.msk.f32.vlgmr.msra.gmra.mxu1 %vm537_vm2, %v887_v23  ;;  %v1629_v23 = vld [vmem:[%s2535_s10 + $0x20] sm:$0xff] }
 0x473   : > { %1937 = vmatprep.mubr.msk.f32.mxu1 %vm2127_vm1, %v2126_v5  ;;  %1936 = vmatpush3.msra.mxu1 %v1193_v24  ;;  %v1628_v24 = vld [vmem:[%s2535_s10 + $0x18] sm:$0xff] }
 0x474   : > { %1945 = vmatprep.subr.mxu1 %v2126_v5 }
 0x4c6   : > { %v960_v26 = vpop.f32.mrf.mxu0 }
 0x4c7   : > { %1933 = vmatmul.mubr.msk.f32.vlgmr.msra.gmra.mxu0 %vm537_vm2, %v960_v26  ;;  %v1626_v26 = vld [vmem:[%s2535_s10 + $0x8] sm:$0xff] }
 0x4c8   : > { %v1914_v27 = vpop.f32.mrf.mxu0  ;;  %1941 = vmatpush3.msra.mxu0 %v1194_v25  ;;  %1942 = vmatprep.mubr.msk.f32.mxu0 %vm2127_vm1, %v2126_v5  ;;  %v1627_v25 = vld [vmem:[%s2535_s10 + $0x10] sm:$0xff] }
 0x4c9   : > { %1950 = vmatprep.subr.mxu0 %v2126_v5  ;;  %v1625_v27 = vld [vmem:[%s2535_s10] sm:$0xff] }
 0x52a   : > { %v1036_v29 = vpop.f32.mrf.mxu1 }
 0x52b   : > { %1938 = vmatmul.mubr.msk.f32.vlgmr.msra.gmra.mxu1 %vm537_vm2, %v1036_v29 }
 0x52c   : > { %v1919_v30 = vpop.f32.mrf.mxu1  ;;  %1946 = vmatpush3.msra.mxu1 %v1195_v28  ;;  %1947 = vmatprep.mubr.msk.f32.mxu1 %vm2127_vm1, %v2126_v5  ;;  %v1821_v28 = vld [vmem:[%s2534_s9] ss:$0 sm:$0xff] }
 0x52d   : > { %1961 = vmatprep.subr.mxu1 %v2126_v5 }
 0x52e   : > { %v1112_v31 = vpop.f32.mrf.mxu0 }
 0x52f   : > { %1943 = vmatmul.mubr.msk.f32.vlgmr.msra.gmra.mxu0 %vm537_vm2, %v1112_v31 }
 0x530   : > { %v1924_v32 = vpop.f32.mrf.mxu0  ;;  %1958 = vmatprep.mubr.msk.f32.mxu0 %vm2127_vm1, %v2126_v5  ;;  %1951 = vmatpush3.msra.mxu0 %v1539_v56 }
 0x531   : > { %1952 = vmatprep.subr.mxu0 %v2126_v5 }
 0x532   : > { %v1188_v33 = vpop.f32.mrf.mxu1  ;;  %1953 = vmatpush3.msra.mxu0 %v1538_v57 }
 0x533   : > { %1948 = vmatmul.mubr.msk.f32.vlgmr.msra.gmra.mxu1 %vm537_vm2, %v1188_v33  ;;  %1954 = vmatprep.subr.mxu0 %v2126_v5 }
 0x534   : > { %v1929_v34 = vpop.f32.mrf.mxu1  ;;  %1993 = vmatprep.mubr.msk.f32.mxu1 %vm2127_vm1, %v2126_v5  ;;  %1962 = vmatpush3.msra.mxu1 %v1640_v59 }
 0x535   : > { %1963 = vmatprep.subr.mxu1 %v2126_v5 }
 0x536   : > { %1964 = vmatpush3.msra.mxu1 %v1639_v60 }
 0x537   : > { %1965 = vmatprep.subr.mxu1 %v2126_v5 }
 0x538   : > { %1966 = vmatpush3.msra.mxu1 %v1638_v61 }
 0x539   : > { %1967 = vmatprep.subr.mxu1 %v2126_v5 }
 0x53a   : > { %1968 = vmatpush3.msra.mxu1 %v1637_v62 }
 0x53b   : > { %1969 = vmatprep.subr.mxu1 %v2126_v5 }
 0x53c   : > { %1970 = vmatpush3.msra.mxu1 %v1636_v16 }
 0x53d   : > { %1971 = vmatprep.subr.mxu1 %v2126_v5 }
 0x53e   : > { %1972 = vmatpush3.msra.mxu1 %v1635_v17 }
 0x53f   : > { %1973 = vmatprep.subr.mxu1 %v2126_v5 }
 0x540   : > { %1974 = vmatpush3.msra.mxu1 %v1634_v18 }
 0x541   : > { %1975 = vmatprep.subr.mxu1 %v2126_v5 }
 0x542   : > { %1976 = vmatpush3.msra.mxu1 %v1633_v19 }
 0x543   : > { %1977 = vmatprep.subr.mxu1 %v2126_v5 }
 0x544   : > { %1978 = vmatpush3.msra.mxu1 %v1632_v20 }
 0x545   : > { %1979 = vmatprep.subr.mxu1 %v2126_v5 }
 0x546   : > { %1980 = vmatpush3.msra.mxu1 %v1631_v21 }
 0x547   : > { %1981 = vmatprep.subr.mxu1 %v2126_v5 }
 0x548   : > { %1982 = vmatpush3.msra.mxu1 %v1630_v22 }
 0x549   : > { %1983 = vmatprep.subr.mxu1 %v2126_v5 }
 0x54a   : > { %1984 = vmatpush3.msra.mxu1 %v1629_v23 }
 0x54b   : > { %1985 = vmatprep.subr.mxu1 %v2126_v5 }
 0x54c   : > { %1986 = vmatpush3.msra.mxu1 %v1628_v24 }
 0x54d   : > { %1987 = vmatprep.subr.mxu1 %v2126_v5 }
 0x54e   : > { %1988 = vmatpush3.msra.mxu1 %v1627_v25 }
 0x54f   : > { %1989 = vmatprep.subr.mxu1 %v2126_v5 }
 0x550   : > { %1990 = vmatpush3.msra.mxu1 %v1626_v26 }
 0x551   : > { %1991 = vmatprep.subr.mxu1 %v2126_v5 }
 0x552   : > { %1992 = vmatpush3.msra.mxu1 %v1625_v27 }
 0x587   : > { %v1265_v35 = vpop.f32.mrf.mxu0 }
 0x588   : > { %v1488_v41 = vsel %vm412_vm0, %v1265_v35, 0.0 }
 0x589   : > { %v1934_v36 = vpop.f32.mrf.mxu0 }
 0x5eb   : > { %v1338_v37 = vpop.f32.mrf.mxu1 }
 0x5ec   : > { %v1489_v39 = vsel %vm412_vm0, %v1338_v37, 0.0 }
 0x5ed   : > { %v1939_v38 = vpop.f32.mrf.mxu1  ;;  %v1490_v43 = vadd.f32 %v1489_v39, %v1488_v41 }
 0x5ef   : > { %v1411_v40 = vpop.f32.mrf.mxu0 }
 0x5f0   : > { %v1491_v42 = vsel %vm412_vm0, %v1411_v40, 0.0 }
 0x5f1   : > { %v1944_v44 = vpop.f32.mrf.mxu0  ;;  %v1492_v45 = vadd.f32 %v1491_v42, %v1490_v43 }
 0x5f3   : > { %v1484_v46 = vpop.f32.mrf.mxu1 }
 0x5f4   : > { %v1493_v47 = vsel %vm412_vm0, %v1484_v46, 0.0 }
 0x5f5   : > { %v1494_v49 = vadd.f32 %v1493_v47, %v1492_v45  ;;  %v1949_v50 = vpop.f32.mrf.mxu1 }
 0x5f7   : > { %v1502_v51 = vadd.f32 %v1818_v48, %v1494_v49 }
 0x5f9   : > { %v2390_v52 = vadd.f32 %v1502_v51, %v2252_v0  ;;  %v1537_v0 = vld [vmem:[%s2533_s8 + $0x8] sm:$0xff] }
 0x5fa   : > { %1955 = vmatpush3.msra.mxu0 %v1537_v0 }
 0x5fb   : > { %v1506_v53 = vsel %vm412_vm0, %v2390_v52, 0.0  ;;  %v1510_v54 = vmul.f32 %v2390_v52, %v2390_v52  ;;  %1956 = vmatprep.subr.mxu0 %v2126_v5  ;;  %v1823_v5 = vld [vmem:[%s2536_s11] ss:$0 sm:$0xff] }
 0x5fc   : > { %1507 = vadd.xlane.f32.xlu0 %v1506_v53  ;;  %1957 = vmatpush3.msra.mxu0 %v1536_v58 }
 0x5fd   : > { %v1511_v55 = vsel %vm412_vm0, %v1510_v54, 0.0 }
 0x5fe   : > { %1512 = vadd.xlane.f32.xlu1 %v1511_v55 }
 0x685   : > { %v1508_v63 = vpop.xlane.xlu0 %1507 }
 0x686   : > { %v1509_v1 = vmul.f32 0.03125, %v1508_v63 }
 0x687   : > { %v1513_v2 = vpop.xlane.xlu1 %1512 }
 0x688   : > { %v1515_v3 = vmul.f32 %v1509_v1, %v1509_v1  ;;  %v1514_v4 = vmul.f32 0.03125, %v1513_v2  ;;  %v1518_v9 = vsub.f32 %v2390_v52, %v1509_v1 }
 0x68a   : > { %v1516_v6 = vsub.f32 %v1514_v4, %v1515_v3 }
 0x68c   : > { %v1517_v7 = vmax.f32 %v1516_v6, 0.0 }
 0x68e   : > { %v1519_v8 = vadd.f32 1e-05, %v1517_v7 }
 0x690   : > { %2060 = vrsqrt.f32 %v1519_v8 }
 0x69d   : > { %v2061_v10 = vpop.eup %2060 }
 0x69e   : > { %v1521_v12 = vmul.f32 %v2061_v10, %v1518_v9 }
 0x6a0   : > { %v1528_v14 = vmul.f32 %v1819_v11, %v1521_v12 }
 0x6a2   : > { %v1535_v15 = vadd.f32 %v1820_v13, %v1528_v14 }
 0x6a4   : > { %1959 = vmatmul.mubr.msk.f32.vlgmr.msra.gmra.mxu0 %vm412_vm0, %v1535_v15 }
 0x764   : > { %v1616_v29 = vpop.f32.mrf.mxu0 }
 0x765   : > { %v1617_v30 = vadd.f32 %v1821_v28, %v1616_v29 }
 0x766   : > { %v1960_v31 = vpop.f32.mrf.mxu0 }
 0x767   : > { %v1621_v32 = vmul.f32 0.70710677, %v1617_v30  ;;  %v1620_v34 = vmul.f32 0.5, %v1617_v30 }
 0x769   : > { %2062 = verf.f32 %v1621_v32 }
 0x776   : > { %v2063_v33 = vpop.eup %2062 }
 0x777   : > { %v1623_v35 = vadd.f32 1.0, %v2063_v33 }
 0x779   : > { %v1624_v36 = vmul.f32 %v1623_v35, %v1620_v34 }
 0x77b   : > { %1994 = vmatmul.mubr.f32.vlgmr.msra.gmra.mxu1 %v1624_v36 }
 0x83b   : > { %v1714_v37 = vpop.f32.mrf.mxu1 }
 0x83c   : > { %v1715_v38 = vadd.f32 %v1823_v5, %v1714_v37 }
 0x83d   : > { %v1995_v39 = vpop.f32.mrf.mxu1 }
 0x83e   : > { %v1718_v40 = vadd.f32 %v1715_v38, %v2390_v52 }
 0x840   : > { %1719 = vst.msk [vmem:[%s404_s17] sm:$0xff] %vm412_vm0, %v1718_v40 }
 0x841   : > { %2077 = shalt.err (!%p2074_p3)
}
 0x842   : > { %s2078_s15 = scalar_lea.hbm %s1732_s0, 128  ;;  %s2082_s17 = scalar_lea.hbm %s2537_s12, 256 }
 0x843   : > { %p2079_p4 = scmp.ne.s32.totalorder %s1732_s0, %s2078_s15  ;;  %p2083_p9 = scmp.lt.s32.totalorder %s1732_s0, %s2537_s12 }
 0x844   : > { %p2084_p10 = scmp.lt.s32.totalorder %s2082_s17, %s2078_s15 }
 0x845   : > { %p2080_p7 = pnand %p2079_p4, %p2237_p5 }
 0x846   : > { %p2085_p11 = por %p2084_p10, %p2083_p9 }
 0x847   : > { %p2081_p8 = pneg %p2080_p7 }
 0x849   : > { %p2086_p12 = pnand %p2085_p11, %p2081_p8 }
 0x84b   : > { %2089 = shalt.err (!%p2086_p12)
}
 0x84c   : > { %1996 = dma.vmem_to_hbm [thread:$0]  (%p2237_p5), %s1735_s18, 128, %s1732_s0, %s1721_s1  }
 0x84d PF: > { %p2002_p13 = scmp.ge.s32.totalorder %s2124_s24, 2  ;;  %s1746_s2 = sand.u32 1, %s2112_s21  }
 0x84e   : > { %s1747_s25 = scalar_lea.sflag [#allocation3], %s1746_s2 }
 0x84f   : > { %p1999_p0 = pnand %p2002_p13, %p2241_p6 }
 0x851   : > { %p2000_p1 = pneg %p1999_p0 }
 0x853   : > { %2107 = dma.done.wait (%p2000_p1), %s1747_s25, 128  }
 0x854   : > { %2109 = vsyncadd (%p2000_p1), %s1747_s25, 4294967168  ;;  %p22_p2 = scmp.ge.s32.totalorder %s2224_s27, 4   ;;  %s2546_s21 = smov %s2116_s22 }
 0x855   : > { %s2547_s22 = smov %s2120_s23  ;;  %s2548_s23 = smov %s2235_s30 }
 0x856   : > { %s2549_s24 = smov %s2224_s27  ;;  %24 = sbr.rel (!%p22_p2) target bundleno = 7 (0x7), region = 103 }
 0x85b   :  { %1752 = vsyncpa [#allocation3], 1 }
 0x85c   :  { %1754 = vsyncpa [#allocation3 + $0x1], 1 }

</bundles_post_ra>
